<compile_context>
chip_gen: v7x
topology: tpu7x:2x2x1
jax: 0.10.0
libtpu: 0.0.40
codegen_flags: <defaults>
</compile_context>

<pallas_src>
import functools

import jax
import jax.numpy as jnp
from jax.experimental import pallas as pl
from jax.experimental.pallas import tpu as pltpu


def se_kernel(x_ref, w1_ref, b1_ref, w2_ref, b2_ref, o_ref, *, inv_hw):
    # x_ref / o_ref: (Bt, C, HW)   w1: (C, Cr)  b1: (1, Cr)  w2: (Cr, C)  b2: (1, C)
    x = x_ref[...]

    # Squeeze: global average pool over the spatial (lane) axis -> (Bt, C).
    # Accumulate in f32; inv_hw is a compile-time Python float.
    squeeze = jnp.sum(x.astype(jnp.float32), axis=-1) * inv_hw

    # fc1 + ReLU : (Bt, C) @ (C, Cr) + (1, Cr)
    z1 = jnp.dot(squeeze, w1_ref[...], preferred_element_type=jnp.float32) + b1_ref[...]
    z1 = jnp.maximum(z1, 0.0)

    # fc2 + sigmoid : (Bt, Cr) @ (Cr, C) + (1, C)
    z2 = jnp.dot(z1, w2_ref[...], preferred_element_type=jnp.float32) + b2_ref[...]
    scale = jax.nn.sigmoid(z2)  # (Bt, C) f32

    # Excite: broadcast the per-channel scale across all spatial lanes.
    o_ref[...] = (x * scale[:, :, None].astype(x.dtype)).astype(o_ref.dtype)


def _vmem_capacity_bytes():
    """Per-TensorCore VMEM capacity; conservative (v7x-sized) fallback."""
    try:
        info = pltpu.get_tpu_info()
        cap = getattr(info, "vmem_capacity_bytes", None)
        if cap:
            return int(cap)
    except Exception:
        pass
    return 64 * 1024 * 1024  # v7x has the smallest VMEM; safe everywhere.


def _pick_batch_tile(B, per_batch_bytes, target_bytes):
    """Largest divisor of B whose block fits target_bytes, keeping >=2 grid steps."""
    best = 1
    for bt in range(1, B + 1):
        if B % bt != 0:
            continue
        if bt > 1 and bt * per_batch_bytes > target_bytes:
            continue
        if B >= 2 and (B // bt) < 2:
            continue  # keep both v7x TensorCores busy via the parallel grid axis
        best = bt
    return best


def se_layer(x, w1, b1, w2, b2):
    """SE forward.  x: (B, C, H, W) NCHW.  w1: (C, Cr), b1: (Cr,), w2: (Cr, C), b2: (C,).

    Weight convention: nn.Linear stores (out, in); here fc weights are passed
    pre-transposed as (in, out) so the kernel does plain row-major matmuls.
    """
    B, C, H, W = x.shape
    HW = H * W
    Cr = w1.shape[1]

    # Free layout plumbing: collapse spatial dims only (no transpose, no HBM pass).
    x3 = x.reshape(B, C, HW)
    b1r = b1.reshape(1, Cr)
    b2r = b2.reshape(1, C)

    vmem_cap = _vmem_capacity_bytes()

    # Batch-tile so each block is MiB-scale (target ~8 MiB, capped by VMEM size).
    per_batch_bytes = C * HW * x.dtype.itemsize
    target_block_bytes = min(8 << 20, vmem_cap // 8)
    Bt = _pick_batch_tile(B, per_batch_bytes, target_block_bytes)
    grid = (B // Bt,)

    # VMEM budget: double-buffered x block + out block, double-buffered weights
    # (grid-invariant index_maps mean they are only DMA'd once), plus margin.
    blk_bytes = Bt * per_batch_bytes
    w_bytes = (C * Cr + Cr + Cr * C + C) * 4
    needed = 4 * blk_bytes + 2 * w_bytes + (2 << 20)
    vmem_limit = int(min(max(needed, 32 << 20), int(vmem_cap * 0.8)))

    kernel = functools.partial(se_kernel, inv_hw=float(1.0 / HW))

    out3 = pl.pallas_call(
        kernel,
        out_shape=jax.ShapeDtypeStruct((B, C, HW), x.dtype),
        grid=grid,
        in_specs=[
            pl.BlockSpec((Bt, C, HW), lambda b: (b, 0, 0)),   # x: Bt batches per step
            pl.BlockSpec((C, Cr), lambda b: (0, 0)),          # w1 (grid-invariant, resident)
            pl.BlockSpec((1, Cr), lambda b: (0, 0)),          # b1
            pl.BlockSpec((Cr, C), lambda b: (0, 0)),          # w2
            pl.BlockSpec((1, C), lambda b: (0, 0)),           # b2
        ],
        out_specs=pl.BlockSpec((Bt, C, HW), lambda b: (b, 0, 0)),
        compiler_params=pltpu.CompilerParams(
            dimension_semantics=("parallel",),
            vmem_limit_bytes=vmem_limit,
        ),
    )(x3, w1, b1r, w2, b2r)

    # Free reshape back to NCHW (same memory layout).
    return out3.reshape(B, C, H, W)


def se_layer_ref(x, w1, b1, w2, b2):
    """Pure-JAX reference mirroring the PyTorch forward."""
    B, C, H, W = x.shape
    squeeze = x.reshape(B, C, -1).mean(axis=2)
    z1 = jnp.maximum(squeeze @ w1 + b1, 0.0)
    scale = jax.nn.sigmoid(z1 @ w2 + b2)
    return x * scale[:, :, None, None]


def _run_case(key, B, C, H, W, R, se_fn):
    Cr = max(C // R, 1)
    kx, kw1, kb1, kw2, kb2 = jax.random.split(key, 5)
    x = jax.random.normal(kx, (B, C, H, W), dtype=jnp.float32)
    # nn.Linear weights are (out, in); stored pre-transposed as (in, out).
    w1 = jax.random.normal(kw1, (C, Cr), dtype=jnp.float32) * 0.1
    b1 = jax.random.normal(kb1, (Cr,), dtype=jnp.float32) * 0.1
    w2 = jax.random.normal(kw2, (Cr, C), dtype=jnp.float32) * 0.1
    b2 = jax.random.normal(kb2, (C,), dtype=jnp.float32) * 0.1

    out = jax.block_until_ready(se_fn(x, w1, b1, w2, b2))
    ref = se_layer_ref(x, w1, b1, w2, b2)
    assert out.shape == (B, C, H, W)
    assert jnp.allclose(out, ref, atol=1e-5, rtol=1e-5), "mismatch vs reference"


if __name__ == "__main__":
    key = jax.random.PRNGKey(0)
    k0, k1 = jax.random.split(key)

    se_fn = jax.jit(se_layer)

    # SELayer(num_channels=32, reduction_ratio=16) -> reduced channels = 2
    _run_case(k0, B=2, C=32, H=8, W=8, R=16, se_fn=se_fn)
    # Non-power-of-two spatial size (typical SE shape family), C=64 -> Cr=4, Bt=2
    _run_case(k1, B=4, C=64, H=7, W=7, R=16, se_fn=se_fn)

    print("KERNEL_OK")
</pallas_src>

<mosaic_0001>
module attributes {stable_mosaic.version = 11 : i64} {
  func.func @se_kernel(%arg0: i32, %arg1: memref<1x32x64xf32, #tpu.memory_space<vmem>>, %arg2: memref<32x2xf32, #tpu.memory_space<vmem>>, %arg3: memref<1x2xf32, #tpu.memory_space<vmem>>, %arg4: memref<2x32xf32, #tpu.memory_space<vmem>>, %arg5: memref<1x32xf32, #tpu.memory_space<vmem>>, %arg6: memref<1x32x64xf32, #tpu.memory_space<vmem>>) attributes {dimension_semantics = [#tpu.dimension_semantics<parallel>], iteration_bounds = array<i64: 2>, scalar_prefetch = 0 : i64, scratch_operands = 0 : i64, tpu.core_type = #tpu.core_type<tc>, window_params = [{transform_indices = @transform_0, window_bounds = array<i64: 1, 32, 64>}, {pipeline_mode = #tpu.pipeline_mode<synchronous>, transform_indices = @transform_1, window_bounds = array<i64: 32, 2>}, {pipeline_mode = #tpu.pipeline_mode<synchronous>, transform_indices = @transform_2, window_bounds = array<i64: 1, 2>}, {pipeline_mode = #tpu.pipeline_mode<synchronous>, transform_indices = @transform_3, window_bounds = array<i64: 2, 32>}, {pipeline_mode = #tpu.pipeline_mode<synchronous>, transform_indices = @transform_4, window_bounds = array<i64: 1, 32>}, {transform_indices = @transform_5, window_bounds = array<i64: 1, 32, 64>}]} {
    %c0 = arith.constant 0 : index
    %c0_0 = arith.constant 0 : index
    %c0_1 = arith.constant 0 : index
    %0 = vector.load %arg1[%c0, %c0_0, %c0_1] : memref<1x32x64xf32, #tpu.memory_space<vmem>>, vector<1x32x64xf32>
    %cst = arith.constant dense<0.000000e+00> : vector<1x32xf32>
    %1 = vector.multi_reduction <add>, %0, %cst [2] : vector<1x32x64xf32> to vector<1x32xf32>
    %cst_2 = arith.constant 1.562500e-02 : f32
    %2 = vector.broadcast %cst_2 : f32 to vector<1x32xf32>
    %3 = arith.mulf %1, %2 : vector<1x32xf32>
    %c0_3 = arith.constant 0 : index
    %c0_4 = arith.constant 0 : index
    %4 = vector.load %arg2[%c0_3, %c0_4] : memref<32x2xf32, #tpu.memory_space<vmem>>, vector<32x2xf32>
    %cst_5 = arith.constant dense<0.000000e+00> : vector<1x2xf32>
    %5 = tpu.matmul %3, %4, %cst_5 {dimension_numbers = #tpu.dot_dimension_numbers<[1], [0], [0], [1], [0, 0, 1, 1], [], []>} : vector<1x32xf32>, vector<32x2xf32>, vector<1x2xf32> -> vector<1x2xf32>
    %c0_6 = arith.constant 0 : index
    %c0_7 = arith.constant 0 : index
    %6 = vector.load %arg3[%c0_6, %c0_7] : memref<1x2xf32, #tpu.memory_space<vmem>>, vector<1x2xf32>
    %7 = arith.addf %5, %6 : vector<1x2xf32>
    %cst_8 = arith.constant 0.000000e+00 : f32
    %8 = vector.broadcast %cst_8 : f32 to vector<1x2xf32>
    %9 = arith.maximumf %7, %8 : vector<1x2xf32>
    %c0_9 = arith.constant 0 : index
    %c0_10 = arith.constant 0 : index
    %10 = vector.load %arg4[%c0_9, %c0_10] : memref<2x32xf32, #tpu.memory_space<vmem>>, vector<2x32xf32>
    %cst_11 = arith.constant dense<0.000000e+00> : vector<1x32xf32>
    %11 = tpu.matmul %9, %10, %cst_11 {dimension_numbers = #tpu.dot_dimension_numbers<[1], [0], [0], [1], [0, 0, 1, 1], [], []>} : vector<1x2xf32>, vector<2x32xf32>, vector<1x32xf32> -> vector<1x32xf32>
    %c0_12 = arith.constant 0 : index
    %c0_13 = arith.constant 0 : index
    %12 = vector.load %arg5[%c0_12, %c0_13] : memref<1x32xf32, #tpu.memory_space<vmem>>, vector<1x32xf32>
    %13 = arith.addf %11, %12 : vector<1x32xf32>
    %14 = arith.negf %13 : vector<1x32xf32>
    %15 = math.exp %14 : vector<1x32xf32>
    %cst_14 = arith.constant 1.000000e+00 : f32
    %16 = vector.broadcast %cst_14 : f32 to vector<1x32xf32>
    %17 = arith.addf %16, %15 : vector<1x32xf32>
    %18 = arith.divf %16, %17 : vector<1x32xf32>
    %19 = vector.shape_cast %18 : vector<1x32xf32> to vector<1x32x1xf32>
    %20 = vector.broadcast %19 : vector<1x32x1xf32> to vector<1x32x64xf32>
    %21 = arith.mulf %0, %20 : vector<1x32x64xf32>
    %c0_15 = arith.constant 0 : index
    %c0_16 = arith.constant 0 : index
    %c0_17 = arith.constant 0 : index
    %22 = vector.load %arg6[%c0_15, %c0_16, %c0_17] : memref<1x32x64xf32, #tpu.memory_space<vmem>>, vector<1x32x64xf32>
    tpu.vector_store %arg6[%c0_15, %c0_16, %c0_17], %21 {strides = array<i32>} : memref<1x32x64xf32, #tpu.memory_space<vmem>>, vector<1x32x64xf32>,
    return
  }
  func.func @transform_0(%arg0: i32) -> (i32, i32, i32) {
    %c0_i32 = arith.constant 0 : i32
    %c0_i32_0 = arith.constant 0 : i32
    %c0_i32_1 = arith.constant 0 : i32
    return %arg0, %c0_i32, %c0_i32_0 : i32, i32, i32
  }
  func.func @transform_1(%arg0: i32) -> (i32, i32) {
    %c0_i32 = arith.constant 0 : i32
    %c0_i32_0 = arith.constant 0 : i32
    %c0_i32_1 = arith.constant 0 : i32
    return %c0_i32, %c0_i32_0 : i32, i32
  }
  func.func @transform_2(%arg0: i32) -> (i32, i32) {
    %c0_i32 = arith.constant 0 : i32
    %c0_i32_0 = arith.constant 0 : i32
    %c0_i32_1 = arith.constant 0 : i32
    return %c0_i32, %c0_i32_0 : i32, i32
  }
  func.func @transform_3(%arg0: i32) -> (i32, i32) {
    %c0_i32 = arith.constant 0 : i32
    %c0_i32_0 = arith.constant 0 : i32
    %c0_i32_1 = arith.constant 0 : i32
    return %c0_i32, %c0_i32_0 : i32, i32
  }
  func.func @transform_4(%arg0: i32) -> (i32, i32) {
    %c0_i32 = arith.constant 0 : i32
    %c0_i32_0 = arith.constant 0 : i32
    %c0_i32_1 = arith.constant 0 : i32
    return %c0_i32, %c0_i32_0 : i32, i32
  }
  func.func @transform_5(%arg0: i32) -> (i32, i32, i32) {
    %c0_i32 = arith.constant 0 : i32
    %c0_i32_0 = arith.constant 0 : i32
    %c0_i32_1 = arith.constant 0 : i32
    return %arg0, %c0_i32, %c0_i32_0 : i32, i32, i32
  }
}

</mosaic_0001>

<bundles_post_ra>
// kernel: se_layer.1
= control target key start
LH: loop header
LB: loop body
LE: loop exit
PB: predicated region body
PF: predicated region fallthrough
CT: control target
= control target key end

     0   :  { %s626_s18 = smov 0   ;;  %s695_s0 = inlined_call_operand.vmem [shape: f32[2,32,64], index: 0, kind: input, shape index: {}]   ;;  %s696_s1 = inlined_call_operand.vmem [shape: f32[32,2], index: 1, kind: input, shape index: {}]   ;;  %s697_s2 = inlined_call_operand.vmem [shape: f32[1,2], index: 2, kind: input, shape index: {}]   ;;  %s698_s3 = inlined_call_operand.vmem [shape: f32[2,32], index: 3, kind: input, shape index: {}]   ;;  %s699_s4 = inlined_call_operand.vmem [shape: f32[1,32], index: 4, kind: input, shape index: {}]   ;;  %s700_s5 = inlined_call_operand.vmem [shape: f32[2,32,64], index: 5, kind: output, shape index: {}]  }
   0x1 LB: > { %s524_s19 = sadd.s32 4294967295, %s591_s18   ;;  %p528_p0 = scmp.ge.s32.totalorder %s591_s18, 1  ;;  %s591_s18 = sphi %s626_s18, %s15_s18  }
   0x2   : > { %p187_p1 = scmp.lt.s32.totalorder %s591_s18, 3 }
   0x4   : > { %p188_p2 = pnand %p528_p0, %p187_p1 }
   0x5   : > { %p215_p3 = scmp.lt.s32.totalorder (!%p188_p2), %s524_s19, 1  ;;  %vm229_vm0 = vcmask (!%p188_p2), 523264   ;;  %v246_v8 = vld [vmem:[%s696_s1] sm:$0xff] (!%p188_p2)  ;;  %v247_v9 = vld [vmem:[%s696_s1 + $0x8] sm:$0xff] (!%p188_p2)  ;;  %v593_v10 = vmov (!%p188_p2), 0.0|0.0   ;;  %v248_v12 = vld [vmem:[%s696_s1 + $0x10] sm:$0xff] (!%p188_p2)  ;;  %v255_v16 = vlaneseq (!%p188_p2) }
   0x6   : > { %191 = sbr.rel (%p188_p2) target bundleno = 755 (0x2f3), region = 40  ;;  %564 = vmatprep.subr.bf16.mxu0 (!%p188_p2), %v593_v10  ;;  %v565_v11 = vpack.c.bf16 (!%p188_p2), %v247_v9, %v246_v8  ;;  %v249_v13 = vld [vmem:[%s696_s1 + $0x18] sm:$0xff] (!%p188_p2)  ;;  %vm594_vm1 = vmmov (!%p188_p2), 0   ;;  %v595_v15 = vmov (!%p188_p2), 0.0   ;;  %vm266_vm2 = vcmask (!%p188_p2), 130112  }
   0x7   : > { %v568_v14 = vpack.c.bf16 (!%p188_p2), %v249_v13, %v248_v12  ;;  %556 = vmatprep.mubr.msk.f32.mxu0 (!%p188_p2), %vm594_vm1, %v595_v15  ;;  %559 = vmatprep.subr.mxu1 (!%p188_p2), %v595_v15  ;;  %v256_v17 = vand.u32 (!%p188_p2), 127, %v255_v16  ;;  %v258_v18 = vshrl.u32 (!%p188_p2), %v255_v16, 7  ;;  %vm273_vm3 = vcmask (!%p188_p2), 195712   ;;  %v356_v41 = vld [vmem:[%s698_s3] sm:$0x3] (!%p188_p2) }
   0x8   : > { %566 = vmatpush3.bf16.msra.mxu0 (!%p188_p2), %v565_v11  ;;  %561 = vmatprep.mubr.msk.f32.mxu1 (!%p188_p2), %vm594_vm1, %v595_v15  ;;  %vm280_vm4 = vcmask (!%p188_p2), 261312   ;;  %vm282_vm5 = vcmask (!%p188_p2), 261120   ;;  %vm362_vm6 = vcmask (!%p188_p2), 1041408   ;;  %v250_v42 = vld [vmem:[%s697_s2] sm:$0x1] (!%p188_p2)  ;;  %vm358_vm7 = vcmask (!%p188_p2), 15360  }
   0x9   : > { %567 = vmatprep.subr.bf16.mxu0 (!%p188_p2), %v593_v10  ;;  %v261_v19 = vadd.s32 (!%p188_p2), 4294967288, %v256_v17  ;;  %v275_v20 = vadd.s32 (!%p188_p2), 4294967272, %v256_v17  ;;  %v268_v22 = vadd.s32 (!%p188_p2), 4294967280, %v256_v17  ;;  %v259_v24 = vsub.s32 (!%p188_p2), %v256_v17, %v258_v18  ;;  %560 = vmatpush3.msk.msra.mxu1 (!%p188_p2), %vm362_vm6, %v356_v41  ;;  %v357_v47 = vld [vmem:[%s699_s4] sm:$0x1] (!%p188_p2) }
   0xa   : > { %v444_v54 = vsub.s32 (!%p188_p2), 0, %v258_v18 }
   0xb   : > { %v264_v26 = vsub.s32 (!%p188_p2), %v261_v19, %v258_v18  ;;  %v278_v27 = vsub.s32 (!%p188_p2), %v275_v20, %v258_v18  ;;  %v271_v28 = vsub.s32 (!%p188_p2), %v268_v22, %v258_v18 }
   0xc   : > { %569 = vmatpush3.bf16.msra.mxu0 (!%p188_p2), %v568_v14 }
   0xd   : > { %s702_s19 = smov (!%p215_p3, %s524_s19), 1 }
   0xe   : > { %s539_s20 = sshll.u32 %s702_s19, 5 }
   0xf   : > { %s219_s23 = scalar_lea.vmem %s695_s0, %s539_s20  ;;  %s224_s15 = scalar_lea.vmem %s700_s5, %s539_s20 }
  0x10   : > { %v642_v0 = vld [vmem:[%s219_s23] sm:$0xff]  ;;  %v644_v1 = vld [vmem:[%s219_s23 + $0x10] sm:$0xff]  ;;  %v646_v2 = vld [vmem:[%s219_s23 + $0x8] sm:$0xff] }
  0x11   : > { %v230_v3 = vsel %vm229_vm0, %v642_v0, 0.0  ;;  %v236_v4 = vsel %vm229_vm0, %v644_v1, 0.0  ;;  %v652_v5 = vld [vmem:[%s219_s23 + $0x18] sm:$0xff]  ;;  %v233_v6 = vsel %vm229_vm0, %v646_v2, 0.0 }
  0x12   : > { %231 = vadd.xlane.f32.xlu0 %v230_v3  ;;  %237 = vadd.xlane.f32.xlu1 %v236_v4  ;;  %v239_v7 = vsel %vm229_vm0, %v652_v5, 0.0 }
  0x16   : > { %234 = vadd.xlane.f32.xlu0 %v233_v6  ;;  %240 = vadd.xlane.f32.xlu1 %v239_v7 }
  0x9f   : > { %v232_v21 = vpop.xlane.xlu0 %231  ;;  %v238_v23 = vpop.xlane.xlu1 %237 }
  0xa0   : > { %v242_v25 = vmul.f32 0.015625, %v232_v21  ;;  %v244_v29 = vmul.f32 0.015625, %v238_v23 }
  0xa2   : > { %v260_v34 = vrot.slane %v242_v25, %v259_v24  ;;  %v272_v37 = vrot.slane %v244_v29, %v271_v28 }
  0xa3   : > { %v235_v30 = vpop.xlane.xlu0 %234  ;;  %v241_v31 = vpop.xlane.xlu1 %240 }
  0xa4   : > { %v243_v32 = vmul.f32 0.015625, %v235_v30  ;;  %v245_v33 = vmul.f32 0.015625, %v241_v31 }
  0xa6   : > { %v265_v35 = vrot.slane %v243_v32, %v264_v26  ;;  %v279_v36 = vrot.slane %v245_v33, %v278_v27 }
  0xa8   : > { %v267_v38 = vsel %vm266_vm2, %v265_v35, %v260_v34 }
  0xa9   : > { %v274_v39 = vsel %vm273_vm3, %v272_v37, %v267_v38 }
  0xaa   : > { %v281_v40 = vsel %vm280_vm4, %v279_v36, %v274_v39 }
  0xab   : > { %557 = vmatmul.mubr.msk.f32.vlgmr.msra.gmra.mrb[0].mxu0 %vm282_vm5, %v281_v40 }
 0x17e   : > { %v351_v43 = vpop.f32.mrb[0].mxu0 }
 0x17f   : > { %v352_v44 = vadd.f32 %v351_v43, %v250_v42  ;;  %v558_v45 = vpop.f32.mrb[1].mxu0 }
 0x181   : > { %v355_v46 = vmax.f32 %v352_v44, 0.0 }
 0x183   : > { %562 = vmatmul.mubr.msk.f32.vlgmr.msra.gmra.mrb[0].mxu1 %vm358_vm7, %v355_v46 }
 0x256   : > { %v432_v48 = vpop.f32.mrb[0].mxu1 }
 0x257   : > { %v433_v49 = vadd.f32 %v432_v48, %v357_v47  ;;  %v563_v50 = vpop.f32.mrb[1].mxu1 }
 0x259   : > { %v536_v51 = vmul.f32 -1.442695, %v433_v49 }
 0x25b   : > { %581 = vpow2.f32 %v536_v51 }
 0x265   : > { %v582_v52 = vpop.eup %581 }
 0x266   : > { %v439_v53 = vadd.f32 1.0, %v582_v52 }
 0x268   : > { %583 = vrcp.f32 %v439_v53 }
 0x272   : > { %v584_v55 = vpop.eup %583 }
 0x273   : > { %v445_v56 = vrot.slane %v584_v55, %v444_v54 }
 0x275   : > { %451 = vbcast.lane.b32.xlu1 %v445_v56, 264  ;;  %447 = vbcast.lane.b32.xlu0 %v445_v56, 256 }
 0x279   : > { %455 = vbcast.lane.b32.xlu1 %v445_v56, 272 }
 0x27d   : > { %459 = vbcast.lane.b32.xlu1 %v445_v56, 280 }
 0x2e7   : > { %v452_v57 = vpop.permute.xlu1 %451  ;;  %v448_v58 = vpop.permute.xlu0 %447 }
 0x2e8   : > { %v462_v59 = vmul.f32 %v452_v57, %v646_v2  ;;  %v461_v60 = vmul.f32 %v448_v58, %v642_v0 }
 0x2ea   : > { %466 = vst.msk [vmem:[%s224_s15 + $0x8] sm:$0xff] %vm229_vm0, %v462_v59  ;;  %465 = vst.msk [vmem:[%s224_s15] sm:$0xff] %vm229_vm0, %v461_v60 }
 0x2eb   : > { %v456_v61 = vpop.permute.xlu1 %455 }
 0x2ec   : > { %v463_v62 = vmul.f32 %v456_v61, %v644_v1 }
 0x2ee   : > { %467 = vst.msk [vmem:[%s224_s15 + $0x10] sm:$0xff] %vm229_vm0, %v463_v62 }
 0x2ef   : > { %v460_v63 = vpop.permute.xlu1 %459 }
 0x2f0   : > { %v464_v3 = vmul.f32 %v460_v63, %v652_v5 }
 0x2f2   : > { %468 = vst.msk [vmem:[%s224_s15 + $0x18] sm:$0xff] %vm229_vm0, %v464_v3 }
 0x2f3 PF: > { %s15_s18 = sadd.s32 1, %s591_s18  }
 0x2f4   : > { %p12_p4 = scmp.ge.s32.totalorder %s15_s18, 4  }
 0x2f6   :  { %14 = sbr.rel (!%p12_p4) target bundleno = 1 (0x1), region = 70 }

</bundles_post_ra>
